<compile_context>
chip_gen: v7x
topology: tpu7x:2x2x1
jax: 0.10.0
libtpu: 0.0.40
codegen_flags: <defaults>
</compile_context>

<pallas_src>
import jax
import jax.numpy as jnp
from jax import lax
from jax.experimental import pallas as pl
from jax.experimental.pallas import tpu as pltpu

KH, KW = 3, 3
N_TAPS = KH * KW
C_OUT = 3
BN_EPS = 1e-5
BN_GAMMA = 1.05   # nn.init.constant_(norm.weight, 1.05)
BN_BETA = 0.05    # nn.init.constant_(norm.bias,   0.05)
LANES = 128


def conv_stats_kernel(x_ref, w_ref, y_ref, stats_ref):
    """Pass 1: 3x3 valid conv (1 input channel) + fused per-channel partial stats.

    x_ref    : VMEM (BN, H, W)           f32  -- one batch tile of the squeezed input
    w_ref    : SMEM (C_OUT*KH*KW,)       f32  -- flattened conv weights
    y_ref    : VMEM (C_OUT, BN, Ho, Wo)  f32  -- conv output tile (CNHW layout)
    stats_ref: VMEM (1, 2*C_OUT, LANES)  f32  -- per-tile [sum, sumsq] per channel (lane splat)
    """
    _, _, Ho, Wo = y_ref.shape

    x = x_ref[...]
    # Hoist the 9 shifted taps once; reused by all 3 output channels.
    taps = [x[:, kh:kh + Ho, kw:kw + Wo]
            for kh in range(KH) for kw in range(KW)]

    for c in range(C_OUT):
        # Conv bias omitted: constant per channel, exactly cancelled by the
        # training-mode BatchNorm mean subtraction.
        acc = w_ref[c * N_TAPS] * taps[0]
        for t in range(1, N_TAPS):
            acc = acc + w_ref[c * N_TAPS + t] * taps[t]

        # Contiguous leading-dim write (no strided mid-dim store).
        y_ref[c] = acc

        # Fused single pass: sum and sum-of-squares for this batch tile.
        s = jnp.sum(acc)
        q = jnp.sum(acc * acc)
        stats_ref[0:1, 2 * c:2 * c + 1, :] = jnp.full((1, 1, LANES), s, jnp.float32)
        stats_ref[0:1, 2 * c + 1:2 * c + 2, :] = jnp.full((1, 1, LANES), q, jnp.float32)


def bn_apply_kernel(scale_ref, shift_ref, y_ref, o_ref):
    """Pass 2: per-channel affine normalize y*scale + shift (in place via aliasing).

    scale_ref/shift_ref : SMEM (C_OUT,) f32
    y_ref / o_ref       : VMEM (C_OUT, BN, Ho, Wo) f32 (aliased HBM buffer)
    """
    for c in range(C_OUT):
        o_ref[c] = y_ref[c] * scale_ref[c] + shift_ref[c]


@jax.jit
def model_forward(x_nchw, conv_w, conv_b=None):
    """x_nchw: (N, 1, H, W) f32; conv_w: (3, 1, 3, 3) f32; conv_b unused (cancels under BN).

    Returns (N, 3, H-2, W-2) f32, matching Conv2d -> training-mode BatchNorm2d.
    """
    del conv_b  # mathematically a no-op through training-mode BN
    N, Cin, H, W = x_nchw.shape
    assert Cin == 1
    Ho, Wo = H - KH + 1, W - KW + 1

    x_sq = x_nchw[:, 0, :, :]                        # (N, H, W)
    w_flat = conv_w.reshape(-1).astype(jnp.float32)  # (27,)

    cparams = pltpu.CompilerParams(
        dimension_semantics=("parallel",),    # megacore-shard the batch axis (v7x)
        vmem_limit_bytes=32 * 1024 * 1024,    # stay inside v7x's scoped default
    )
    # TODO(synk): for large H, additionally tile the Ho axis (with a KH-1 row halo).

    # ---- Pass 1: conv + per-tile partial BN stats, tiled/pipelined over N. ----
    conv_buf, stats = pl.pallas_call(
        conv_stats_kernel,
        out_shape=(
            jax.ShapeDtypeStruct((C_OUT, N, Ho, Wo), jnp.float32),
            jax.ShapeDtypeStruct((N, 2 * C_OUT, LANES), jnp.float32),
        ),
        grid=(N,),
        in_specs=[
            pl.BlockSpec((1, H, W), lambda i: (i, 0, 0)),
            pl.BlockSpec(memory_space=pltpu.MemorySpace.SMEM),
        ],
        out_specs=(
            pl.BlockSpec((C_OUT, 1, Ho, Wo), lambda i: (0, i, 0, 0)),
            pl.BlockSpec((1, 2 * C_OUT, LANES), lambda i: (i, 0, 0)),
        ),
        compiler_params=cparams,
    )(x_sq, w_flat)

    # ---- Combine per-tile partials into global batch statistics (tiny). ----
    tot = jnp.sum(stats, axis=0)[:, 0]                 # (2*C,)
    count = jnp.float32(N * Ho * Wo)
    mean = tot[0::2] / count                           # (C,)
    var = tot[1::2] / count - mean * mean              # biased batch variance
    inv_std = lax.rsqrt(var + BN_EPS)
    scale = (BN_GAMMA * inv_std).astype(jnp.float32)           # (C,)
    shift = (BN_BETA - mean * BN_GAMMA * inv_std).astype(jnp.float32)
    # TODO(synk): BN running_mean/running_var state update is not modeled (forward output only).

    # ---- Pass 2: normalize in place (aliased conv buffer), tiled over N. ----
    out_cnhw = pl.pallas_call(
        bn_apply_kernel,
        out_shape=jax.ShapeDtypeStruct((C_OUT, N, Ho, Wo), jnp.float32),
        grid=(N,),
        in_specs=[
            pl.BlockSpec(memory_space=pltpu.MemorySpace.SMEM),
            pl.BlockSpec(memory_space=pltpu.MemorySpace.SMEM),
            pl.BlockSpec((C_OUT, 1, Ho, Wo), lambda i: (0, i, 0, 0)),
        ],
        out_specs=pl.BlockSpec((C_OUT, 1, Ho, Wo), lambda i: (0, i, 0, 0)),
        input_output_aliases={2: 0},
        compiler_params=cparams,
    )(scale, shift, conv_buf)

    # Layout plumbing back to NCHW in the wrapper.
    return jnp.transpose(out_cnhw, (1, 0, 2, 3))


def reference_forward(x_nchw, conv_w, conv_b):
    """Pure-JAX reference (conv with bias + training-mode batchnorm)."""
    y = lax.conv_general_dilated(
        x_nchw, conv_w, window_strides=(1, 1), padding="VALID",
        dimension_numbers=("NCHW", "OIHW", "NCHW"),
    ) + conv_b[None, :, None, None]
    mean = jnp.mean(y, axis=(0, 2, 3), keepdims=True)
    var = jnp.mean((y - mean) ** 2, axis=(0, 2, 3), keepdims=True)
    return (y - mean) / jnp.sqrt(var + BN_EPS) * BN_GAMMA + BN_BETA


if __name__ == "__main__":
    key = jax.random.PRNGKey(0)
    k_x, k_w, k_b = jax.random.split(key, 3)

    # Small input consistent with Conv2d(1, 3, (3,3)): NCHW = (2, 1, 16, 16)
    N, H, W = 2, 16, 16
    x = jax.random.normal(k_x, (N, 1, H, W), dtype=jnp.float32)

    # Deterministic parameter init mirroring the PyTorch __init__:
    #   conv weight: kaiming_normal_(fan_out, relu) -> std = sqrt(2 / (3*3*3))
    #   conv bias:   default U(-1/sqrt(fan_in), 1/sqrt(fan_in)), fan_in = 9
    w_std = (2.0 / (C_OUT * KH * KW)) ** 0.5
    conv_w = w_std * jax.random.normal(k_w, (C_OUT, 1, KH, KW), dtype=jnp.float32)
    bound = 1.0 / (1 * KH * KW) ** 0.5
    conv_b = jax.random.uniform(
        k_b, (C_OUT,), minval=-bound, maxval=bound, dtype=jnp.float32
    )
    # BN gamma/beta are the module's constants 1.05 / 0.05 (folded into the kernel).

    out = jax.block_until_ready(model_forward(x, conv_w, conv_b))
    ref = jax.block_until_ready(reference_forward(x, conv_w, conv_b))

    assert out.shape == (N, C_OUT, H - 2, W - 2)
    assert jnp.allclose(out, ref, atol=1e-4, rtol=1e-4)

    print("KERNEL_OK")
</pallas_src>

<mosaic_0001>
module attributes {stable_mosaic.version = 11 : i64} {
  func.func @conv_stats_kernel(%arg0: i32, %arg1: memref<1x16x16xf32, #tpu.memory_space<vmem>>, %arg2: memref<27xf32, #tpu.memory_space<smem>>, %arg3: memref<3x1x14x14xf32, #tpu.memory_space<vmem>>, %arg4: memref<1x6x128xf32, #tpu.memory_space<vmem>>) attributes {dimension_semantics = [#tpu.dimension_semantics<parallel>], iteration_bounds = array<i64: 2>, scalar_prefetch = 0 : i64, scratch_operands = 0 : i64, tpu.core_type = #tpu.core_type<tc>, window_params = [{transform_indices = @transform_0, window_bounds = array<i64: 1, 16, 16>}, {transform_indices = @transform_1, window_bounds = array<i64: 27>}, {transform_indices = @transform_2, window_bounds = array<i64: 3, 1, 14, 14>}, {transform_indices = @transform_3, window_bounds = array<i64: 1, 6, 128>}]} {
    %c0 = arith.constant 0 : index
    %c0_0 = arith.constant 0 : index
    %c0_1 = arith.constant 0 : index
    %0 = vector.load %arg1[%c0, %c0_0, %c0_1] : memref<1x16x16xf32, #tpu.memory_space<vmem>>, vector<1x16x16xf32>
    %1 = vector.extract_strided_slice %0 {offsets = [0, 0, 0], sizes = [1, 14, 14], strides = [1, 1, 1]} : vector<1x16x16xf32> to vector<1x14x14xf32>
    %2 = vector.extract_strided_slice %0 {offsets = [0, 0, 1], sizes = [1, 14, 14], strides = [1, 1, 1]} : vector<1x16x16xf32> to vector<1x14x14xf32>
    %3 = vector.extract_strided_slice %0 {offsets = [0, 0, 2], sizes = [1, 14, 14], strides = [1, 1, 1]} : vector<1x16x16xf32> to vector<1x14x14xf32>
    %4 = vector.extract_strided_slice %0 {offsets = [0, 1, 0], sizes = [1, 14, 14], strides = [1, 1, 1]} : vector<1x16x16xf32> to vector<1x14x14xf32>
    %5 = vector.extract_strided_slice %0 {offsets = [0, 1, 1], sizes = [1, 14, 14], strides = [1, 1, 1]} : vector<1x16x16xf32> to vector<1x14x14xf32>
    %6 = vector.extract_strided_slice %0 {offsets = [0, 1, 2], sizes = [1, 14, 14], strides = [1, 1, 1]} : vector<1x16x16xf32> to vector<1x14x14xf32>
    %7 = vector.extract_strided_slice %0 {offsets = [0, 2, 0], sizes = [1, 14, 14], strides = [1, 1, 1]} : vector<1x16x16xf32> to vector<1x14x14xf32>
    %8 = vector.extract_strided_slice %0 {offsets = [0, 2, 1], sizes = [1, 14, 14], strides = [1, 1, 1]} : vector<1x16x16xf32> to vector<1x14x14xf32>
    %9 = vector.extract_strided_slice %0 {offsets = [0, 2, 2], sizes = [1, 14, 14], strides = [1, 1, 1]} : vector<1x16x16xf32> to vector<1x14x14xf32>
    %c0_2 = arith.constant 0 : index
    %10 = memref.load %arg2[%c0_2] : memref<27xf32, #tpu.memory_space<smem>>
    %11 = vector.broadcast %10 : f32 to vector<1x14x14xf32>
    %12 = arith.mulf %11, %1 : vector<1x14x14xf32>
    %c1 = arith.constant 1 : index
    %13 = memref.load %arg2[%c1] : memref<27xf32, #tpu.memory_space<smem>>
    %14 = vector.broadcast %13 : f32 to vector<1x14x14xf32>
    %15 = arith.mulf %14, %2 : vector<1x14x14xf32>
    %16 = arith.addf %12, %15 : vector<1x14x14xf32>
    %c2 = arith.constant 2 : index
    %17 = memref.load %arg2[%c2] : memref<27xf32, #tpu.memory_space<smem>>
    %18 = vector.broadcast %17 : f32 to vector<1x14x14xf32>
    %19 = arith.mulf %18, %3 : vector<1x14x14xf32>
    %20 = arith.addf %16, %19 : vector<1x14x14xf32>
    %c3 = arith.constant 3 : index
    %21 = memref.load %arg2[%c3] : memref<27xf32, #tpu.memory_space<smem>>
    %22 = vector.broadcast %21 : f32 to vector<1x14x14xf32>
    %23 = arith.mulf %22, %4 : vector<1x14x14xf32>
    %24 = arith.addf %20, %23 : vector<1x14x14xf32>
    %c4 = arith.constant 4 : index
    %25 = memref.load %arg2[%c4] : memref<27xf32, #tpu.memory_space<smem>>
    %26 = vector.broadcast %25 : f32 to vector<1x14x14xf32>
    %27 = arith.mulf %26, %5 : vector<1x14x14xf32>
    %28 = arith.addf %24, %27 : vector<1x14x14xf32>
    %c5 = arith.constant 5 : index
    %29 = memref.load %arg2[%c5] : memref<27xf32, #tpu.memory_space<smem>>
    %30 = vector.broadcast %29 : f32 to vector<1x14x14xf32>
    %31 = arith.mulf %30, %6 : vector<1x14x14xf32>
    %32 = arith.addf %28, %31 : vector<1x14x14xf32>
    %c6 = arith.constant 6 : index
    %33 = memref.load %arg2[%c6] : memref<27xf32, #tpu.memory_space<smem>>
    %34 = vector.broadcast %33 : f32 to vector<1x14x14xf32>
    %35 = arith.mulf %34, %7 : vector<1x14x14xf32>
    %36 = arith.addf %32, %35 : vector<1x14x14xf32>
    %c7 = arith.constant 7 : index
    %37 = memref.load %arg2[%c7] : memref<27xf32, #tpu.memory_space<smem>>
    %38 = vector.broadcast %37 : f32 to vector<1x14x14xf32>
    %39 = arith.mulf %38, %8 : vector<1x14x14xf32>
    %40 = arith.addf %36, %39 : vector<1x14x14xf32>
    %c8 = arith.constant 8 : index
    %41 = memref.load %arg2[%c8] : memref<27xf32, #tpu.memory_space<smem>>
    %42 = vector.broadcast %41 : f32 to vector<1x14x14xf32>
    %43 = arith.mulf %42, %9 : vector<1x14x14xf32>
    %44 = arith.addf %40, %43 : vector<1x14x14xf32>
    %c0_3 = arith.constant 0 : index
    %c0_4 = arith.constant 0 : index
    %c0_5 = arith.constant 0 : index
    %c0_6 = arith.constant 0 : index
    %45 = vector.load %arg3[%c0_3, %c0_4, %c0_5, %c0_6] : memref<3x1x14x14xf32, #tpu.memory_space<vmem>>, vector<1x1x14x14xf32>
    %46 = vector.shape_cast %45 : vector<1x1x14x14xf32> to vector<1x14x14xf32>
    %47 = vector.shape_cast %44 : vector<1x14x14xf32> to vector<1x1x14x14xf32>
    tpu.vector_store %arg3[%c0_3, %c0_4, %c0_5, %c0_6], %47 {strides = array<i32>} : memref<3x1x14x14xf32, #tpu.memory_space<vmem>>, vector<1x1x14x14xf32>,
    %48 = vector.shape_cast %44 : vector<1x14x14xf32> to vector<1x1x14x14xf32>
    %cst = arith.constant dense<0.000000e+00> : vector<1xf32>
    %49 = vector.multi_reduction <add>, %48, %cst [1, 2, 3] : vector<1x1x14x14xf32> to vector<1xf32>
    %50 = vector.shape_cast %49 : vector<1xf32> to vector<1x1x1x1xf32>
    %51 = vector.extract %50[0, 0, 0, 0] : f32 from vector<1x1x1x1xf32>
    %52 = arith.mulf %44, %44 : vector<1x14x14xf32>
    %53 = vector.shape_cast %52 : vector<1x14x14xf32> to vector<1x1x14x14xf32>
    %cst_7 = arith.constant dense<0.000000e+00> : vector<1xf32>
    %54 = vector.multi_reduction <add>, %53, %cst_7 [1, 2, 3] : vector<1x1x14x14xf32> to vector<1xf32>
    %55 = vector.shape_cast %54 : vector<1xf32> to vector<1x1x1x1xf32>
    %56 = vector.extract %55[0, 0, 0, 0] : f32 from vector<1x1x1x1xf32>
    %57 = vector.broadcast %51 : f32 to vector<1x1x128xf32>
    %c0_8 = arith.constant 0 : index
    %c0_9 = arith.constant 0 : index
    %c0_10 = arith.constant 0 : index
    %58 = vector.load %arg4[%c0_8, %c0_9, %c0_10] : memref<1x6x128xf32, #tpu.memory_space<vmem>>, vector<1x1x128xf32>
    tpu.vector_store %arg4[%c0_8, %c0_9, %c0_10], %57 {strides = array<i32>} : memref<1x6x128xf32, #tpu.memory_space<vmem>>, vector<1x1x128xf32>,
    %59 = vector.broadcast %56 : f32 to vector<1x1x128xf32>
    %c0_11 = arith.constant 0 : index
    %c1_12 = arith.constant 1 : index
    %c0_13 = arith.constant 0 : index
    %60 = vector.load %arg4[%c0_11, %c1_12, %c0_13] : memref<1x6x128xf32, #tpu.memory_space<vmem>>, vector<1x1x128xf32>
    tpu.vector_store %arg4[%c0_11, %c1_12, %c0_13], %59 {strides = array<i32>} : memref<1x6x128xf32, #tpu.memory_space<vmem>>, vector<1x1x128xf32>,
    %c9 = arith.constant 9 : index
    %61 = memref.load %arg2[%c9] : memref<27xf32, #tpu.memory_space<smem>>
    %62 = vector.broadcast %61 : f32 to vector<1x14x14xf32>
    %63 = arith.mulf %62, %1 : vector<1x14x14xf32>
    %c10 = arith.constant 10 : index
    %64 = memref.load %arg2[%c10] : memref<27xf32, #tpu.memory_space<smem>>
    %65 = vector.broadcast %64 : f32 to vector<1x14x14xf32>
    %66 = arith.mulf %65, %2 : vector<1x14x14xf32>
    %67 = arith.addf %63, %66 : vector<1x14x14xf32>
    %c11 = arith.constant 11 : index
    %68 = memref.load %arg2[%c11] : memref<27xf32, #tpu.memory_space<smem>>
    %69 = vector.broadcast %68 : f32 to vector<1x14x14xf32>
    %70 = arith.mulf %69, %3 : vector<1x14x14xf32>
    %71 = arith.addf %67, %70 : vector<1x14x14xf32>
    %c12 = arith.constant 12 : index
    %72 = memref.load %arg2[%c12] : memref<27xf32, #tpu.memory_space<smem>>
    %73 = vector.broadcast %72 : f32 to vector<1x14x14xf32>
    %74 = arith.mulf %73, %4 : vector<1x14x14xf32>
    %75 = arith.addf %71, %74 : vector<1x14x14xf32>
    %c13 = arith.constant 13 : index
    %76 = memref.load %arg2[%c13] : memref<27xf32, #tpu.memory_space<smem>>
    %77 = vector.broadcast %76 : f32 to vector<1x14x14xf32>
    %78 = arith.mulf %77, %5 : vector<1x14x14xf32>
    %79 = arith.addf %75, %78 : vector<1x14x14xf32>
    %c14 = arith.constant 14 : index
    %80 = memref.load %arg2[%c14] : memref<27xf32, #tpu.memory_space<smem>>
    %81 = vector.broadcast %80 : f32 to vector<1x14x14xf32>
    %82 = arith.mulf %81, %6 : vector<1x14x14xf32>
    %83 = arith.addf %79, %82 : vector<1x14x14xf32>
    %c15 = arith.constant 15 : index
    %84 = memref.load %arg2[%c15] : memref<27xf32, #tpu.memory_space<smem>>
    %85 = vector.broadcast %84 : f32 to vector<1x14x14xf32>
    %86 = arith.mulf %85, %7 : vector<1x14x14xf32>
    %87 = arith.addf %83, %86 : vector<1x14x14xf32>
    %c16 = arith.constant 16 : index
    %88 = memref.load %arg2[%c16] : memref<27xf32, #tpu.memory_space<smem>>
    %89 = vector.broadcast %88 : f32 to vector<1x14x14xf32>
    %90 = arith.mulf %89, %8 : vector<1x14x14xf32>
    %91 = arith.addf %87, %90 : vector<1x14x14xf32>
    %c17 = arith.constant 17 : index
    %92 = memref.load %arg2[%c17] : memref<27xf32, #tpu.memory_space<smem>>
    %93 = vector.broadcast %92 : f32 to vector<1x14x14xf32>
    %94 = arith.mulf %93, %9 : vector<1x14x14xf32>
    %95 = arith.addf %91, %94 : vector<1x14x14xf32>
    %c1_14 = arith.constant 1 : index
    %c0_15 = arith.constant 0 : index
    %c0_16 = arith.constant 0 : index
    %c0_17 = arith.constant 0 : index
    %96 = vector.load %arg3[%c1_14, %c0_15, %c0_16, %c0_17] : memref<3x1x14x14xf32, #tpu.memory_space<vmem>>, vector<1x1x14x14xf32>
    %97 = vector.shape_cast %96 : vector<1x1x14x14xf32> to vector<1x14x14xf32>
    %98 = vector.shape_cast %95 : vector<1x14x14xf32> to vector<1x1x14x14xf32>
    tpu.vector_store %arg3[%c1_14, %c0_15, %c0_16, %c0_17], %98 {strides = array<i32>} : memref<3x1x14x14xf32, #tpu.memory_space<vmem>>, vector<1x1x14x14xf32>,
    %99 = vector.shape_cast %95 : vector<1x14x14xf32> to vector<1x1x14x14xf32>
    %cst_18 = arith.constant dense<0.000000e+00> : vector<1xf32>
    %100 = vector.multi_reduction <add>, %99, %cst_18 [1, 2, 3] : vector<1x1x14x14xf32> to vector<1xf32>
    %101 = vector.shape_cast %100 : vector<1xf32> to vector<1x1x1x1xf32>
    %102 = vector.extract %101[0, 0, 0, 0] : f32 from vector<1x1x1x1xf32>
    %103 = arith.mulf %95, %95 : vector<1x14x14xf32>
    %104 = vector.shape_cast %103 : vector<1x14x14xf32> to vector<1x1x14x14xf32>
    %cst_19 = arith.constant dense<0.000000e+00> : vector<1xf32>
    %105 = vector.multi_reduction <add>, %104, %cst_19 [1, 2, 3] : vector<1x1x14x14xf32> to vector<1xf32>
    %106 = vector.shape_cast %105 : vector<1xf32> to vector<1x1x1x1xf32>
    %107 = vector.extract %106[0, 0, 0, 0] : f32 from vector<1x1x1x1xf32>
    %108 = vector.broadcast %102 : f32 to vector<1x1x128xf32>
    %c0_20 = arith.constant 0 : index
    %c2_21 = arith.constant 2 : index
    %c0_22 = arith.constant 0 : index
    %109 = vector.load %arg4[%c0_20, %c2_21, %c0_22] : memref<1x6x128xf32, #tpu.memory_space<vmem>>, vector<1x1x128xf32>
    tpu.vector_store %arg4[%c0_20, %c2_21, %c0_22], %108 {strides = array<i32>} : memref<1x6x128xf32, #tpu.memory_space<vmem>>, vector<1x1x128xf32>,
    %110 = vector.broadcast %107 : f32 to vector<1x1x128xf32>
    %c0_23 = arith.constant 0 : index
    %c3_24 = arith.constant 3 : index
    %c0_25 = arith.constant 0 : index
    %111 = vector.load %arg4[%c0_23, %c3_24, %c0_25] : memref<1x6x128xf32, #tpu.memory_space<vmem>>, vector<1x1x128xf32>
    tpu.vector_store %arg4[%c0_23, %c3_24, %c0_25], %110 {strides = array<i32>} : memref<1x6x128xf32, #tpu.memory_space<vmem>>, vector<1x1x128xf32>,
    %c18 = arith.constant 18 : index
    %112 = memref.load %arg2[%c18] : memref<27xf32, #tpu.memory_space<smem>>
    %113 = vector.broadcast %112 : f32 to vector<1x14x14xf32>
    %114 = arith.mulf %113, %1 : vector<1x14x14xf32>
    %c19 = arith.constant 19 : index
    %115 = memref.load %arg2[%c19] : memref<27xf32, #tpu.memory_space<smem>>
    %116 = vector.broadcast %115 : f32 to vector<1x14x14xf32>
    %117 = arith.mulf %116, %2 : vector<1x14x14xf32>
    %118 = arith.addf %114, %117 : vector<1x14x14xf32>
    %c20 = arith.constant 20 : index
    %119 = memref.load %arg2[%c20] : memref<27xf32, #tpu.memory_space<smem>>
    %120 = vector.broadcast %119 : f32 to vector<1x14x14xf32>
    %121 = arith.mulf %120, %3 : vector<1x14x14xf32>
    %122 = arith.addf %118, %121 : vector<1x14x14xf32>
    %c21 = arith.constant 21 : index
    %123 = memref.load %arg2[%c21] : memref<27xf32, #tpu.memory_space<smem>>
    %124 = vector.broadcast %123 : f32 to vector<1x14x14xf32>
    %125 = arith.mulf %124, %4 : vector<1x14x14xf32>
    %126 = arith.addf %122, %125 : vector<1x14x14xf32>
    %c22 = arith.constant 22 : index
    %127 = memref.load %arg2[%c22] : memref<27xf32, #tpu.memory_space<smem>>
    %128 = vector.broadcast %127 : f32 to vector<1x14x14xf32>
    %129 = arith.mulf %128, %5 : vector<1x14x14xf32>
    %130 = arith.addf %126, %129 : vector<1x14x14xf32>
    %c23 = arith.constant 23 : index
    %131 = memref.load %arg2[%c23] : memref<27xf32, #tpu.memory_space<smem>>
    %132 = vector.broadcast %131 : f32 to vector<1x14x14xf32>
    %133 = arith.mulf %132, %6 : vector<1x14x14xf32>
    %134 = arith.addf %130, %133 : vector<1x14x14xf32>
    %c24 = arith.constant 24 : index
    %135 = memref.load %arg2[%c24] : memref<27xf32, #tpu.memory_space<smem>>
    %136 = vector.broadcast %135 : f32 to vector<1x14x14xf32>
    %137 = arith.mulf %136, %7 : vector<1x14x14xf32>
    %138 = arith.addf %134, %137 : vector<1x14x14xf32>
    %c25 = arith.constant 25 : index
    %139 = memref.load %arg2[%c25] : memref<27xf32, #tpu.memory_space<smem>>
    %140 = vector.broadcast %139 : f32 to vector<1x14x14xf32>
    %141 = arith.mulf %140, %8 : vector<1x14x14xf32>
    %142 = arith.addf %138, %141 : vector<1x14x14xf32>
    %c26 = arith.constant 26 : index
    %143 = memref.load %arg2[%c26] : memref<27xf32, #tpu.memory_space<smem>>
    %144 = vector.broadcast %143 : f32 to vector<1x14x14xf32>
    %145 = arith.mulf %144, %9 : vector<1x14x14xf32>
    %146 = arith.addf %142, %145 : vector<1x14x14xf32>
    %c2_26 = arith.constant 2 : index
    %c0_27 = arith.constant 0 : index
    %c0_28 = arith.constant 0 : index
    %c0_29 = arith.constant 0 : index
    %147 = vector.load %arg3[%c2_26, %c0_27, %c0_28, %c0_29] : memref<3x1x14x14xf32, #tpu.memory_space<vmem>>, vector<1x1x14x14xf32>
    %148 = vector.shape_cast %147 : vector<1x1x14x14xf32> to vector<1x14x14xf32>
    %149 = vector.shape_cast %146 : vector<1x14x14xf32> to vector<1x1x14x14xf32>
    tpu.vector_store %arg3[%c2_26, %c0_27, %c0_28, %c0_29], %149 {strides = array<i32>} : memref<3x1x14x14xf32, #tpu.memory_space<vmem>>, vector<1x1x14x14xf32>,
    %150 = vector.shape_cast %146 : vector<1x14x14xf32> to vector<1x1x14x14xf32>
    %cst_30 = arith.constant dense<0.000000e+00> : vector<1xf32>
    %151 = vector.multi_reduction <add>, %150, %cst_30 [1, 2, 3] : vector<1x1x14x14xf32> to vector<1xf32>
    %152 = vector.shape_cast %151 : vector<1xf32> to vector<1x1x1x1xf32>
    %153 = vector.extract %152[0, 0, 0, 0] : f32 from vector<1x1x1x1xf32>
    %154 = arith.mulf %146, %146 : vector<1x14x14xf32>
    %155 = vector.shape_cast %154 : vector<1x14x14xf32> to vector<1x1x14x14xf32>
    %cst_31 = arith.constant dense<0.000000e+00> : vector<1xf32>
    %156 = vector.multi_reduction <add>, %155, %cst_31 [1, 2, 3] : vector<1x1x14x14xf32> to vector<1xf32>
    %157 = vector.shape_cast %156 : vector<1xf32> to vector<1x1x1x1xf32>
    %158 = vector.extract %157[0, 0, 0, 0] : f32 from vector<1x1x1x1xf32>
    %159 = vector.broadcast %153 : f32 to vector<1x1x128xf32>
    %c0_32 = arith.constant 0 : index
    %c4_33 = arith.constant 4 : index
    %c0_34 = arith.constant 0 : index
    %160 = vector.load %arg4[%c0_32, %c4_33, %c0_34] : memref<1x6x128xf32, #tpu.memory_space<vmem>>, vector<1x1x128xf32>
    tpu.vector_store %arg4[%c0_32, %c4_33, %c0_34], %159 {strides = array<i32>} : memref<1x6x128xf32, #tpu.memory_space<vmem>>, vector<1x1x128xf32>,
    %161 = vector.broadcast %158 : f32 to vector<1x1x128xf32>
    %c0_35 = arith.constant 0 : index
    %c5_36 = arith.constant 5 : index
    %c0_37 = arith.constant 0 : index
    %162 = vector.load %arg4[%c0_35, %c5_36, %c0_37] : memref<1x6x128xf32, #tpu.memory_space<vmem>>, vector<1x1x128xf32>
    tpu.vector_store %arg4[%c0_35, %c5_36, %c0_37], %161 {strides = array<i32>} : memref<1x6x128xf32, #tpu.memory_space<vmem>>, vector<1x1x128xf32>,
    return
  }
  func.func @transform_0(%arg0: i32) -> (i32, i32, i32) {
    %c0_i32 = arith.constant 0 : i32
    %c0_i32_0 = arith.constant 0 : i32
    %c0_i32_1 = arith.constant 0 : i32
    return %arg0, %c0_i32, %c0_i32_0 : i32, i32, i32
  }
  func.func @transform_1(%arg0: i32) -> i32 {
    %c0_i32 = arith.constant 0 : i32
    %c0_i32_0 = arith.constant 0 : i32
    return %c0_i32 : i32
  }
  func.func @transform_2(%arg0: i32) -> (i32, i32, i32, i32) {
    %c0_i32 = arith.constant 0 : i32
    %c0_i32_0 = arith.constant 0 : i32
    %c0_i32_1 = arith.constant 0 : i32
    %c0_i32_2 = arith.constant 0 : i32
    return %c0_i32, %arg0, %c0_i32_0, %c0_i32_1 : i32, i32, i32, i32
  }
  func.func @transform_3(%arg0: i32) -> (i32, i32, i32) {
    %c0_i32 = arith.constant 0 : i32
    %c0_i32_0 = arith.constant 0 : i32
    %c0_i32_1 = arith.constant 0 : i32
    return %arg0, %c0_i32, %c0_i32_0 : i32, i32, i32
  }
}

module attributes {stable_mosaic.version = 11 : i64} {
  func.func @bn_apply_kernel(%arg0: i32, %arg1: memref<3xf32, #tpu.memory_space<smem>>, %arg2: memref<3xf32, #tpu.memory_space<smem>>, %arg3: memref<3x1x14x14xf32, #tpu.memory_space<vmem>>, %arg4: memref<3x1x14x14xf32, #tpu.memory_space<vmem>>) attributes {dimension_semantics = [#tpu.dimension_semantics<parallel>], iteration_bounds = array<i64: 2>, scalar_prefetch = 0 : i64, scratch_operands = 0 : i64, tpu.core_type = #tpu.core_type<tc>, window_params = [{transform_indices = @transform_0, window_bounds = array<i64: 3>}, {transform_indices = @transform_1, window_bounds = array<i64: 3>}, {transform_indices = @transform_2, window_bounds = array<i64: 3, 1, 14, 14>}, {transform_indices = @transform_3, window_bounds = array<i64: 3, 1, 14, 14>}]} {
    %c0 = arith.constant 0 : index
    %c0_0 = arith.constant 0 : index
    %c0_1 = arith.constant 0 : index
    %c0_2 = arith.constant 0 : index
    %0 = vector.load %arg3[%c0, %c0_0, %c0_1, %c0_2] : memref<3x1x14x14xf32, #tpu.memory_space<vmem>>, vector<1x1x14x14xf32>
    %1 = vector.shape_cast %0 : vector<1x1x14x14xf32> to vector<1x14x14xf32>
    %c0_3 = arith.constant 0 : index
    %2 = memref.load %arg1[%c0_3] : memref<3xf32, #tpu.memory_space<smem>>
    %3 = vector.broadcast %2 : f32 to vector<1x14x14xf32>
    %4 = arith.mulf %1, %3 : vector<1x14x14xf32>
    %c0_4 = arith.constant 0 : index
    %5 = memref.load %arg2[%c0_4] : memref<3xf32, #tpu.memory_space<smem>>
    %6 = vector.broadcast %5 : f32 to vector<1x14x14xf32>
    %7 = arith.addf %4, %6 : vector<1x14x14xf32>
    %c0_5 = arith.constant 0 : index
    %c0_6 = arith.constant 0 : index
    %c0_7 = arith.constant 0 : index
    %c0_8 = arith.constant 0 : index
    %8 = vector.load %arg4[%c0_5, %c0_6, %c0_7, %c0_8] : memref<3x1x14x14xf32, #tpu.memory_space<vmem>>, vector<1x1x14x14xf32>
    %9 = vector.shape_cast %8 : vector<1x1x14x14xf32> to vector<1x14x14xf32>
    %10 = vector.shape_cast %7 : vector<1x14x14xf32> to vector<1x1x14x14xf32>
    tpu.vector_store %arg4[%c0_5, %c0_6, %c0_7, %c0_8], %10 {strides = array<i32>} : memref<3x1x14x14xf32, #tpu.memory_space<vmem>>, vector<1x1x14x14xf32>,
    %c1 = arith.constant 1 : index
    %c0_9 = arith.constant 0 : index
    %c0_10 = arith.constant 0 : index
    %c0_11 = arith.constant 0 : index
    %11 = vector.load %arg3[%c1, %c0_9, %c0_10, %c0_11] : memref<3x1x14x14xf32, #tpu.memory_space<vmem>>, vector<1x1x14x14xf32>
    %12 = vector.shape_cast %11 : vector<1x1x14x14xf32> to vector<1x14x14xf32>
    %c1_12 = arith.constant 1 : index
    %13 = memref.load %arg1[%c1_12] : memref<3xf32, #tpu.memory_space<smem>>
    %14 = vector.broadcast %13 : f32 to vector<1x14x14xf32>
    %15 = arith.mulf %12, %14 : vector<1x14x14xf32>
    %c1_13 = arith.constant 1 : index
    %16 = memref.load %arg2[%c1_13] : memref<3xf32, #tpu.memory_space<smem>>
    %17 = vector.broadcast %16 : f32 to vector<1x14x14xf32>
    %18 = arith.addf %15, %17 : vector<1x14x14xf32>
    %c1_14 = arith.constant 1 : index
    %c0_15 = arith.constant 0 : index
    %c0_16 = arith.constant 0 : index
    %c0_17 = arith.constant 0 : index
    %19 = vector.load %arg4[%c1_14, %c0_15, %c0_16, %c0_17] : memref<3x1x14x14xf32, #tpu.memory_space<vmem>>, vector<1x1x14x14xf32>
    %20 = vector.shape_cast %19 : vector<1x1x14x14xf32> to vector<1x14x14xf32>
    %21 = vector.shape_cast %18 : vector<1x14x14xf32> to vector<1x1x14x14xf32>
    tpu.vector_store %arg4[%c1_14, %c0_15, %c0_16, %c0_17], %21 {strides = array<i32>} : memref<3x1x14x14xf32, #tpu.memory_space<vmem>>, vector<1x1x14x14xf32>,
    %c2 = arith.constant 2 : index
    %c0_18 = arith.constant 0 : index
    %c0_19 = arith.constant 0 : index
    %c0_20 = arith.constant 0 : index
    %22 = vector.load %arg3[%c2, %c0_18, %c0_19, %c0_20] : memref<3x1x14x14xf32, #tpu.memory_space<vmem>>, vector<1x1x14x14xf32>
    %23 = vector.shape_cast %22 : vector<1x1x14x14xf32> to vector<1x14x14xf32>
    %c2_21 = arith.constant 2 : index
    %24 = memref.load %arg1[%c2_21] : memref<3xf32, #tpu.memory_space<smem>>
    %25 = vector.broadcast %24 : f32 to vector<1x14x14xf32>
    %26 = arith.mulf %23, %25 : vector<1x14x14xf32>
    %c2_22 = arith.constant 2 : index
    %27 = memref.load %arg2[%c2_22] : memref<3xf32, #tpu.memory_space<smem>>
    %28 = vector.broadcast %27 : f32 to vector<1x14x14xf32>
    %29 = arith.addf %26, %28 : vector<1x14x14xf32>
    %c2_23 = arith.constant 2 : index
    %c0_24 = arith.constant 0 : index
    %c0_25 = arith.constant 0 : index
    %c0_26 = arith.constant 0 : index
    %30 = vector.load %arg4[%c2_23, %c0_24, %c0_25, %c0_26] : memref<3x1x14x14xf32, #tpu.memory_space<vmem>>, vector<1x1x14x14xf32>
    %31 = vector.shape_cast %30 : vector<1x1x14x14xf32> to vector<1x14x14xf32>
    %32 = vector.shape_cast %29 : vector<1x14x14xf32> to vector<1x1x14x14xf32>
    tpu.vector_store %arg4[%c2_23, %c0_24, %c0_25, %c0_26], %32 {strides = array<i32>} : memref<3x1x14x14xf32, #tpu.memory_space<vmem>>, vector<1x1x14x14xf32>,
    return
  }
  func.func @transform_0(%arg0: i32) -> i32 {
    %c0_i32 = arith.constant 0 : i32
    %c0_i32_0 = arith.constant 0 : i32
    return %c0_i32 : i32
  }
  func.func @transform_1(%arg0: i32) -> i32 {
    %c0_i32 = arith.constant 0 : i32
    %c0_i32_0 = arith.constant 0 : i32
    return %c0_i32 : i32
  }
  func.func @transform_2(%arg0: i32) -> (i32, i32, i32, i32) {
    %c0_i32 = arith.constant 0 : i32
    %c0_i32_0 = arith.constant 0 : i32
    %c0_i32_1 = arith.constant 0 : i32
    %c0_i32_2 = arith.constant 0 : i32
    return %c0_i32, %arg0, %c0_i32_0, %c0_i32_1 : i32, i32, i32, i32
  }
  func.func @transform_3(%arg0: i32) -> (i32, i32, i32, i32) {
    %c0_i32 = arith.constant 0 : i32
    %c0_i32_0 = arith.constant 0 : i32
    %c0_i32_1 = arith.constant 0 : i32
    %c0_i32_2 = arith.constant 0 : i32
    return %c0_i32, %arg0, %c0_i32_0, %c0_i32_1 : i32, i32, i32, i32
  }
}

</mosaic_0001>

<bundles_post_ra>
// kernel: model_forward.3
= control target key start
LH: loop header
LB: loop body
LE: loop exit
PB: predicated region body
PF: predicated region fallthrough
CT: control target
= control target key end

     0   :  { %8 = vsyncpa [#allocation3], 0  ;;  %s699_s0 = inlined_call_operand.vmem [shape: f32[3], index: 0, kind: input, shape index: {}]   ;;  %s700_s1 = inlined_call_operand.vmem [shape: f32[3], index: 1, kind: input, shape index: {}]   ;;  %s701_s2 = inlined_call_operand.vmem [shape: f32[3,2,14,14], index: 2, kind: input, shape index: {}, may-alias: {2,3}]   ;;  %s702_s3 = inlined_call_operand.vmem [shape: f32[3,2,14,14], index: 3, kind: output, shape index: {}, may-alias: {2,3}]  }
   0x1   :  { %9 = vsyncpa [#allocation5], 0  ;;  %s589_s12 = smov 0   ;;  %s591_s13 = smov 0  }
   0x2   :  { %s593_s14 = smov 0  }
   0x3 LB: > { %s605_s15 = sadd.s32 4294967295, %s565_s14   ;;  %s608_s16 = sadd.s32 1, %s565_s14   ;;  %s565_s14 = sphi %s593_s14, %s718_s14   ;;  %s561_s13 = sphi %s591_s13, %s717_s13   ;;  %s557_s12 = sphi %s589_s12, %s716_s12  }
   0x4   : > { %s61_s17 = ssub.s32 %s565_s14, %s608_s16  ;;  %s64_s18 = sadd.s32 1, %s561_s13 }
   0x5   : > { %p62_p0 = scmp.eq.s32.totalorder %s61_s17, 0  ;;  %p71_p1 = scmp.ne.s32.totalorder %s561_s13, %s557_s12 }
   0x6   : > { %p72_p2 = scmp.eq.s32.totalorder %s565_s14, 0  ;;  %p101_p3 = scmp.eq.s32.totalorder %s605_s15, 1 }
   0x7   : > { %s618_s19 = scalar_select %p62_p0, %s561_s13, %s64_s18  }
   0x8   : > { %p620_p4 = por %p72_p2, %p71_p1  ;;  %p624_p5 = por %p101_p3, %p71_p1 }
   0x9   : > { %p431_p6 = scmp.ge.s32.totalorder %s565_s14, 1  ;;  %p114_p7 = scmp.lt.s32.totalorder %s565_s14, 3 }
   0xa   : > { %s705_s20 = scalar_select %p620_p4, 1, 0 }
   0xb   : > { %s706_s21 = scalar_select %p624_p5, 1, 0 }
   0xc   : > { %p703_p8 = scmp.eq.s32.totalorder %s605_s15, 0  ;;  %p631_p9 = pnand %p431_p6, %p114_p7 }
   0xd   : > { %s127_s25 = sshll.u32 %s699_s0, 4  ;;  %s138_s28 = sshll.u32 %s700_s1, 4  ;;  %s128_s25 = int_to_ptr.vmem [resolvable:$true] %s127_s25  ;;  %s139_s28 = int_to_ptr.vmem [resolvable:$true] %s138_s28 }
   0xe   : > { %s707_s22 = scalar_select %p631_p9, 1, 0 }
   0xf   : > { %p468_p10 = pneg %p631_p9  ;;  %s505_s30 = scalar_lea.vmem %s128_s25, 16 }
  0x10   : > { %p506_p12 = scmp.ne.s32.totalorder %s128_s25, %s505_s30  ;;  %p513_p2 = scmp.lt.s32.totalorder %s128_s25, %s128_s25 }
  0x11   : > { %p645_p11 = pnand %p703_p8, %p468_p10  ;;  %p514_p3 = scmp.lt.s32.totalorder %s505_s30, %s505_s30 }
  0x13   : > { %p507_p13 = pneg %p645_p11  ;;  %p515_p6 = por %p514_p3, %p513_p2 }
  0x15   : > { %p508_p0 = pnand %p507_p13, %p506_p12 }
  0x17   : > { %p509_p1 = pneg %p508_p0 }
  0x19   : > { %p516_p7 = pnand %p515_p6, %p509_p1 }
  0x1b   : > { %519 = shalt.err (!%p516_p7)
}
  0x1c   : > { %s567_s4 = smov [#allocation2]   ;;  %s520_s5 = scalar_lea.vmem %s139_s28, 16 }
  0x1d   : > { %471 = dma.vmem_to_smem (!%p645_p11), %s128_s25, 16, %s567_s4, [#allocation3]  }
  0x1e   : > { %p521_p10 = scmp.ne.s32.totalorder %s139_s28, %s520_s5  ;;  %p528_p9 = scmp.lt.s32.totalorder %s139_s28, %s139_s28 }
  0x1f   : > { %p529_p4 = scmp.lt.s32.totalorder %s520_s5, %s520_s5 }
  0x20   : > { %p523_p8 = pnand %p521_p10, %p507_p13 }
  0x21   : > { %p530_p12 = por %p529_p4, %p528_p9 }
  0x22   : > { %p524_p5 = pneg %p523_p8 }
  0x24   : > { %p531_p0 = pnand %p530_p12, %p524_p5 }
  0x26   : > { %534 = shalt.err (!%p531_p0)
}
  0x27   : > { %s568_s6 = smov [#allocation4]   ;;  %p434_p1 = scmp.ge.s32.totalorder %s565_s14, 2 }
  0x28   : > { %474 = dma.vmem_to_smem (!%p645_p11), %s139_s28, 16, %s568_s6, [#allocation5]  }
  0x29   : > { %145 = sbr.rel (%p434_p1) target bundleno = 55 (0x37), region = 24  ;;  %p709_p2 = scmp.ne.s32.totalorder (!%p434_p1), %s705_s20, 0 }
  0x30   : > { %148 = sbr.rel (!%p709_p2) target bundleno = 55 (0x37), region = 28  ;;  %s150_s7 = sand.u32 (%p709_p2), 1, %s561_s13  }
  0x31   : > { %s456_s8 = sshll.u32 (%p709_p2), %s565_s14, 4  ;;  %s458_s9 = smul.u32 (%p709_p2), 48, %s150_s7 }
  0x32   : > { %s155_s17 = scalar_lea.vmem (%p709_p2), %s701_s2, %s456_s8 }
  0x33   : > { %v193_v0 = vld [vmem:[%s155_s17] sm:$0xff] (%p709_p2)  ;;  %v195_v1 = vld [vmem:[%s155_s17 + $0x8] sm:$0xff] (%p709_p2)  ;;  %s152_s18 = scalar_lea.vmem (%p709_p2), [#allocation6], %s458_s9 }
  0x34   : > { %v197_v2 = vld [vmem:[%s155_s17 + $0x20] sm:$0xff] (%p709_p2)  ;;  %v199_v3 = vld [vmem:[%s155_s17 + $0x28] sm:$0xff] (%p709_p2)  ;;  %194 = vst [vmem:[%s152_s18] sm:$0xff] (%p709_p2), %v193_v0  ;;  %196 = vst [vmem:[%s152_s18 + $0x8] sm:$0xff] (%p709_p2), %v195_v1 }
  0x35   : > { %v201_v4 = vld [vmem:[%s155_s17 + $0x40] sm:$0xff] (%p709_p2)  ;;  %v203_v5 = vld [vmem:[%s155_s17 + $0x48] sm:$0xff] (%p709_p2)  ;;  %198 = vst [vmem:[%s152_s18 + $0x10] sm:$0xff] (%p709_p2), %v197_v2  ;;  %200 = vst [vmem:[%s152_s18 + $0x18] sm:$0xff] (%p709_p2), %v199_v3 }
  0x36   : > { %202 = vst [vmem:[%s152_s18 + $0x20] sm:$0xff] (%p709_p2), %v201_v4  ;;  %204 = vst [vmem:[%s152_s18 + $0x28] sm:$0xff] (%p709_p2), %v203_v5 }
  0x37 PF: > { %p710_p4 = scmp.ne.s32.totalorder %s707_s22, 0 }
  0x38   : > { %p711_p5 = scmp.eq.s32.totalorder (!%p710_p4), %s605_s15, 0 }
  0x39   : > { %213 = sbr.rel (%p710_p4) target bundleno = 96 (0x60), region = 66 }
  0x40   : > { %548 = dma.done.wait (%p711_p5), [#allocation3], 16   ;;  %p712_p8 = pmov %p711_p5 }
  0x41   : > { %p713_p9 = pmov %p711_p5 }
  0x42   : > { %550 = vsyncadd (%p712_p8), [#allocation3], 4294967280 }
  0x43   : > { %552 = dma.done.wait (%p713_p9), [#allocation5], 16   ;;  %p714_p11 = pmov %p711_p5 }
  0x44   : > { %s224_s14 = sand.u32 1, %s557_s12  }
  0x45   : > { %554 = vsyncadd (%p714_p11), [#allocation5], 4294967280  ;;  %s459_s20 = smul.u32 48, %s224_s14 }
  0x47   : > { %s226_s23 = scalar_lea.vmem [#allocation6], %s459_s20 }
  0x48   : > { %230 = sfence }
  0x49   : > { %s249_s24 = sld [smem:[#allocation2]]  ;;  %s442_s25 = sld [smem:[#allocation2 + $0x1]]  ;;  %v247_v6 = vld [vmem:[%s226_s23] sm:$0xff]  ;;  %v248_v7 = vld [vmem:[%s226_s23 + $0x8] sm:$0x3f]  ;;  %v440_v9 = vld [vmem:[%s226_s23 + $0x10] sm:$0xff] }
  0x4a   : > { %s253_s22 = sld [smem:[#allocation4]]  ;;  %s443_s26 = sld [smem:[#allocation4 + $0x1]]  ;;  %v441_v10 = vld [vmem:[%s226_s23 + $0x18] sm:$0x3f]  ;;  %vm257_vm0 = vcmask 113664   ;;  %vm259_vm1 = vcmask 111616  }
  0x4b   : > { %s448_s27 = sld [smem:[#allocation2 + $0x2]]  ;;  %v446_v16 = vld [vmem:[%s226_s23 + $0x20] sm:$0xff]  ;;  %v447_v17 = vld [vmem:[%s226_s23 + $0x28] sm:$0x3f]  ;;  %s246_s12 = scalar_lea.vmem [#allocation7], %s459_s20 }
  0x4c   : > { %s674_s28 = sld [smem:[#allocation4 + $0x2]]  ;;  %p715_p13 = scmp.ne.s32.totalorder %s706_s21, 0 }
  0x4d   : > { %s457_s29 = sshll.u32 (%p715_p13), %s605_s15, 4 }
  0x4e   : > { %s298_s5 = scalar_lea.vmem (%p715_p13), %s702_s3, %s457_s29 }
  0x4f   : > { %v250_v8 = vstv %s249_s24  ;;  %v265_v14 = vstv %s442_s25 }
  0x50   : > { %v251_v11 = vmul.f32 %v250_v8, %v247_v6  ;;  %v254_v12 = vstv %s253_s22  ;;  %v252_v13 = vmul.f32 %v250_v8, %v248_v7  ;;  %v269_v15 = vstv %s443_s26 }
  0x51   : > { %v266_v20 = vmul.f32 %v440_v9, %v265_v14  ;;  %v267_v21 = vmul.f32 %v441_v10, %v265_v14  ;;  %v279_v22 = vstv %s448_s27  ;;  %295 = sbr.rel (!%p715_p13) target bundleno = 96 (0x60), region = 82 }
  0x52   : > { %v255_v18 = vadd.f32 %v254_v12, %v251_v11  ;;  %v256_v19 = vadd.f32 %v254_v12, %v252_v13  ;;  %v283_v23 = vstv %s674_s28  ;;  %v280_v26 = vmul.f32 %v446_v16, %v279_v22 }
  0x53   : > { %v270_v24 = vadd.f32 %v269_v15, %v266_v20  ;;  %v271_v25 = vadd.f32 %v269_v15, %v267_v21  ;;  %v281_v27 = vmul.f32 %v447_v17, %v279_v22 }
  0x54   : > { %258 = vst.msk [vmem:[%s246_s12] sm:$0xff] %vm257_vm0, %v255_v18  ;;  %v284_v28 = vadd.f32 %v283_v23, %v280_v26 }
  0x55   : > { %260 = vst.msk [vmem:[%s246_s12 + $0x8] sm:$0x3f] %vm259_vm1, %v256_v19  ;;  %445 = vst.msk [vmem:[%s246_s12 + $0x18] sm:$0x3f] %vm259_vm1, %v271_v25  ;;  %v285_v29 = vadd.f32 %v283_v23, %v281_v27 }
  0x56   : > { %444 = vst.msk [vmem:[%s246_s12 + $0x10] sm:$0xff] %vm257_vm0, %v270_v24  ;;  %450 = vst.msk [vmem:[%s246_s12 + $0x20] sm:$0xff] %vm257_vm0, %v284_v28 }
  0x57   : > { %451 = vst.msk [vmem:[%s246_s12 + $0x28] sm:$0x3f] %vm259_vm1, %v285_v29 }
  0x5b   : > { %v336_v30 = vld [vmem:[%s246_s12] sm:$0xff] }
  0x5c   : > { %v338_v31 = vld [vmem:[%s246_s12 + $0x8] sm:$0xff]  ;;  %v342_v33 = vld [vmem:[%s246_s12 + $0x18] sm:$0xff]  ;;  %337 = vst [vmem:[%s298_s5] sm:$0xff] %v336_v30 }
  0x5d   : > { %v340_v32 = vld [vmem:[%s246_s12 + $0x10] sm:$0xff]  ;;  %v344_v34 = vld [vmem:[%s246_s12 + $0x20] sm:$0xff]  ;;  %339 = vst [vmem:[%s298_s5 + $0x8] sm:$0xff] %v338_v31  ;;  %343 = vst [vmem:[%s298_s5 + $0x28] sm:$0xff] %v342_v33 }
  0x5e   : > { %v346_v35 = vld [vmem:[%s246_s12 + $0x28] sm:$0xff]  ;;  %341 = vst [vmem:[%s298_s5 + $0x20] sm:$0xff] %v340_v32  ;;  %345 = vst [vmem:[%s298_s5 + $0x40] sm:$0xff] %v344_v34 }
  0x5f   : > { %347 = vst [vmem:[%s298_s5 + $0x48] sm:$0xff] %v346_v35 }
  0x60 PF: > { %p12_p3 = scmp.ge.s32.totalorder %s608_s16, 4   ;;  %s716_s12 = smov %s561_s13 }
  0x61   : > { %s717_s13 = smov %s618_s19  ;;  %s718_s14 = smov %s608_s16 }
  0x62   :  { %14 = sbr.rel (!%p12_p3) target bundleno = 3 (0x3), region = 156 }
  0x69   :  { %363 = vsyncpa [#allocation3], 1 }
  0x6a   :  { %365 = vsyncpa [#allocation3 + $0x1], 1 }
  0x6b   :  { %366 = vsyncpa [#allocation5], 1 }

// kernel: model_forward.2
= control target key start
LH: loop header
LB: loop body
LE: loop exit
PB: predicated region body
PF: predicated region fallthrough
CT: control target
= control target key end

     0   :  { %9 = vsyncpa [#allocation3], 0  ;;  %s989_s12 = smov 0   ;;  %s991_s13 = smov 0   ;;  %s1326_s0 = inlined_call_operand.vmem [shape: f32[2,16,16], index: 0, kind: input, shape index: {}]   ;;  %s1327_s1 = inlined_call_operand.vmem [shape: f32[27], index: 1, kind: input, shape index: {}]   ;;  %s1328_s2 = inlined_call_operand.vmem [shape: f32[3,2,14,14], index: 2, kind: output, shape index: {0}]   ;;  %s1329_s3 = inlined_call_operand.vmem [shape: f32[2,6,128], index: 3, kind: output, shape index: {1}]  }
   0x1   :  { %s993_s14 = smov 0  }
   0x2 LB: > { %s1002_s15 = sadd.s32 4294967295, %s964_s14   ;;  %s1004_s16 = sadd.s32 1, %s964_s14   ;;  %s964_s14 = sphi %s993_s14, %s1334_s14   ;;  %s960_s13 = sphi %s991_s13, %s1333_s13   ;;  %s956_s12 = sphi %s989_s12, %s1332_s12  }
   0x3   : > { %s66_s17 = ssub.s32 %s964_s14, %s1004_s16  ;;  %s69_s18 = sadd.s32 1, %s960_s13 }
   0x4   : > { %p67_p0 = scmp.eq.s32.totalorder %s66_s17, 0  ;;  %p79_p1 = scmp.ne.s32.totalorder %s960_s13, %s956_s12 }
   0x5   : > { %p80_p2 = scmp.eq.s32.totalorder %s1002_s15, 1  ;;  %p829_p3 = scmp.ge.s32.totalorder %s964_s14, 1 }
   0x6   : > { %s1012_s19 = scalar_select %p67_p0, %s960_s13, %s69_s18  }
   0x7   : > { %p1014_p4 = por %p80_p2, %p79_p1  ;;  %p119_p5 = scmp.lt.s32.totalorder %s964_s14, 3 }
   0x8   : > { %p894_p6 = scmp.eq.s32.totalorder %s1002_s15, 0  ;;  %s132_s24 = sshll.u32 %s1327_s1, 4  ;;  %s133_s24 = int_to_ptr.vmem [resolvable:$true] %s132_s24 }
   0x9   : > { %p1019_p7 = pnand %p829_p3, %p119_p5  ;;  %s923_s25 = scalar_lea.vmem %s133_s24, 16 }
   0xa   : > { %p924_p10 = scmp.ne.s32.totalorder %s133_s24, %s923_s25  ;;  %p931_p0 = scmp.lt.s32.totalorder %s133_s24, %s133_s24 }
   0xb   : > { %p890_p8 = pneg %p1019_p7  ;;  %p932_p1 = scmp.lt.s32.totalorder %s923_s25, %s923_s25 }
   0xd   : > { %p891_p9 = pnand %p894_p6, %p890_p8  ;;  %p933_p2 = por %p932_p1, %p931_p0 }
   0xf   : > { %p925_p11 = pneg %p891_p9 }
  0x11   : > { %p926_p12 = pnand %p925_p11, %p924_p10 }
  0x13   : > { %p927_p13 = pneg %p926_p12 }
  0x15   : > { %p934_p3 = pnand %p933_p2, %p927_p13 }
  0x17   : > { %937 = shalt.err (!%p934_p3)
}
  0x18   : > { %s966_s26 = smov [#allocation2]   ;;  %153 = sbr.rel (%p1019_p7) target bundleno = 442 (0x1ba), region = 28 }
  0x19   : > { %893 = dma.vmem_to_smem (!%p891_p9), %s133_s24, 16, %s966_s26, [#allocation3]  }
  0x1f   : > { %951 = dma.done.wait (%p894_p6), [#allocation3], 16  }
  0x20   : > { %953 = vsyncadd (%p894_p6), [#allocation3], 4294967280 }
  0x21   : > { %159 = sfence }
  0x22   : > { %p181_p5 = scmp.lt.s32.totalorder %s1002_s15, 1  ;;  %s846_s27 = sld [smem:[#allocation2 + $0xa]]  ;;  %vm230_vm0 = vcmask 1046528   ;;  %vm278_vm1 = vcmask 1045504   ;;  %vm322_vm2 = vcmask 111616   ;;  %vm320_vm3 = vcmask 113664  }
  0x23   : > { %s837_s28 = sld [smem:[#allocation2 + $0x1]]  ;;  %s857_s30 = sld [smem:[#allocation2 + $0x13]] }
  0x24   : > { %s1038_s29 = scalar_select %p181_p5, %s1002_s15, 1 }
  0x25   : > { %s838_s8 = sld [smem:[#allocation2 + $0x2]]  ;;  %s967_s9 = smov 127  }
  0x26   : > { %s871_s4 = sshll.u32 %s1038_s29, 4  ;;  %s847_s10 = sld [smem:[#allocation2 + $0xb]] }
  0x27   : > { %s185_s7 = scalar_lea.vmem %s1326_s0, %s871_s4  ;;  %s840_s11 = sld [smem:[#allocation2 + $0x4]] }
  0x28   : > { %v1044_v0 = vld [vmem:[%s185_s7] sm:$0xff]  ;;  %v1046_v1 = vld [vmem:[%s185_s7 + $0x8] sm:$0xff]  ;;  %v359_v2 = vstv %s846_s27  ;;  %s849_s14 = sld [smem:[#allocation2 + $0xd]]  ;;  %s1058_s17 = sld [smem:[#allocation2 + $0x14]] }
  0x29   : > { %v197_v3 = vstv %s837_s28  ;;  %v360_v4 = vmul.f32 %v359_v2, %v1044_v0  ;;  %v361_v6 = vmul.f32 %v359_v2, %v1046_v1  ;;  %v518_v8 = vstv %s857_s30  ;;  %s860_s18 = sld [smem:[#allocation2 + $0x16]]  ;;  %s1060_s21 = sld [smem:[#allocation2 + $0x5]] }
  0x2a   : > { %v198_v5 = vmul.f32 %v197_v3, %v1044_v0  ;;  %v199_v7 = vmul.f32 %v197_v3, %v1046_v1  ;;  %v520_v9 = vmul.f32 %v518_v8, %v1046_v1  ;;  %v519_v10 = vmul.f32 %v518_v8, %v1044_v0  ;;  %s1066_s22 = sld [smem:[#allocation2 + $0xe]]  ;;  %s968_s23 = smov 126  }
  0x2b   : > { %364 = vrot.lane.b32.xlu1 %v360_v4, %s967_s9  ;;  %v211_v11 = vstv %s838_s8  ;;  %s1077_s24 = sld [smem:[#allocation2 + $0x17]]  ;;  %s1081_s25 = sld [smem:[#allocation2 + $0x3]] }
  0x2c   : > { %202 = vrot.lane.b32.xlu0 %v198_v5, %s967_s9  ;;  %v213_v12 = vmul.f32 %v211_v11, %v1046_v1  ;;  %v212_v13 = vmul.f32 %v211_v11, %v1044_v0  ;;  %v373_v14 = vstv %s847_s10  ;;  %s1083_s26 = sld [smem:[#allocation2 + $0xc]]  ;;  %s1092_s27 = sld [smem:[#allocation2 + $0x15]] }
  0x2d   : > { %v239_v15 = vstv %s840_s11  ;;  %v375_v17 = vmul.f32 %v373_v14, %v1046_v1  ;;  %v374_v18 = vmul.f32 %v373_v14, %v1044_v0  ;;  %s1097_s28 = sld [smem:[#allocation2 + $0x6]]  ;;  %s1099_s30 = sld [smem:[#allocation2 + $0xf]] }
  0x2e   : > { %v400_v16 = vstv %s849_s14  ;;  %v532_v19 = vstv %s1058_s17  ;;  %v241_v20 = vmul.f32 %v239_v15, %v1046_v1  ;;  %v240_v21 = vmul.f32 %v239_v15, %v1044_v0  ;;  %s1107_s4 = sld [smem:[#allocation2 + $0x18]]  ;;  %s1133_s5 = sld [smem:[#allocation2 + $0x7]] }
  0x2f   : > { %366 = vrot.lane.b32.xlu1 %v361_v6, %s967_s9  ;;  %v559_v22 = vstv %s860_s18  ;;  %v401_v23 = vmul.f32 %v400_v16, %v1044_v0  ;;  %v402_v24 = vmul.f32 %v400_v16, %v1046_v1  ;;  %v534_v25 = vmul.f32 %v532_v19, %v1046_v1  ;;  %s1144_s6 = sld [smem:[#allocation2 + $0x10]]  ;;  %s863_s7 = sld [smem:[#allocation2 + $0x19]] }
  0x30   : > { %204 = vrot.lane.b32.xlu0 %v199_v7, %s967_s9  ;;  %v256_v26 = vstv %s1060_s21  ;;  %v533_v27 = vmul.f32 %v532_v19, %v1044_v0  ;;  %v560_v28 = vmul.f32 %v559_v22, %v1044_v0  ;;  %v1090_v29 = vmul.f32 %v559_v22, %v1046_v1  ;;  %s844_s8 = sld [smem:[#allocation2 + $0x8]]  ;;  %s853_s10 = sld [smem:[#allocation2 + $0x11]] }
  0x31   : > { %v245_v30 = vrot.slane %v241_v20, 1  ;;  %v244_v31 = vrot.slane %v240_v21, 1  ;;  %v406_v32 = vrot.slane %v402_v24, 1  ;;  %v405_v33 = vrot.slane %v401_v23, 1  ;;  %s864_s11 = sld [smem:[#allocation2 + $0x1a]]  ;;  %s1242_s14 = sld [smem:[#allocation2 + $0x9]] }
  0x32   : > { %v1095_v34 = vmul.f32 %v256_v26, %v1046_v1  ;;  %v417_v35 = vstv %s1066_s22  ;;  %v565_v36 = vrot.slane %v1090_v29, 1  ;;  %v564_v37 = vrot.slane %v560_v28, 1  ;;  %s1245_s17 = sld [smem:[#allocation2 + $0x12]]  ;;  %s172_s18 = sand.u32 1, %s956_s12  }
  0x33   : > { %525 = vrot.lane.b32.xlu1 %v520_v9, %s967_s9  ;;  %v257_v38 = vmul.f32 %v256_v26, %v1044_v0  ;;  %v246_v39 = vsel %vm230_vm0, %v244_v31, %v245_v30  ;;  %v407_v40 = vsel %vm230_vm0, %v405_v33, %v406_v32  ;;  %v1112_v42 = vmul.f32 %v417_v35, %v1044_v0  ;;  %s873_s21 = smul.u32 48, %s172_s18  ;;  %s836_s22 = sshll.u32 %s1038_s29, 3 }
  0x34   : > { %523 = vrot.lane.b32.xlu0 %v519_v10, %s967_s9  ;;  %v262_v41 = vrot.slane %v1095_v34, 1  ;;  %v1115_v43 = vmul.f32 %v417_v35, %v1046_v1  ;;  %v576_v44 = vstv %s1077_s24  ;;  %v225_v45 = vstv %s1081_s25  ;;  %s189_s25 = scalar_lea.vmem %s1329_s3, %s836_s22 }
  0x35   : > { %v387_v46 = vstv %s1083_s26  ;;  %v566_v47 = vsel %vm230_vm0, %v564_v37, %v565_v36  ;;  %v261_v48 = vrot.slane %v257_v38, 1  ;;  %v1124_v49 = vmul.f32 %v225_v45, %v1046_v1  ;;  %s1272_s12 = scalar_lea.vmem [#allocation4], %s873_s21 }
  0x36   : > { %v546_v50 = vstv %s1092_s27  ;;  %v226_v51 = vmul.f32 %v225_v45, %v1044_v0  ;;  %v388_v52 = vmul.f32 %v387_v46, %v1044_v0  ;;  %v1130_v53 = vmul.f32 %v387_v46, %v1046_v1 }
  0x37   : > { %218 = vrot.lane.b32.xlu1 %v213_v12, %s968_s23  ;;  %v547_v54 = vmul.f32 %v546_v50, %v1044_v0  ;;  %v232_v55 = vrot.slane %v1124_v49, 1  ;;  %v1137_v56 = vmul.f32 %v546_v50, %v1046_v1  ;;  %v273_v57 = vstv %s1097_s28 }
  0x38   : > { %216 = vrot.lane.b32.xlu0 %v212_v13, %s968_s23  ;;  %v434_v58 = vstv %s1099_s30  ;;  %v231_v59 = vrot.slane %v226_v51, 1  ;;  %v392_v60 = vrot.slane %v388_v52, 1  ;;  %v393_v61 = vrot.slane %v1130_v53, 1 }
  0x39   : > { %v551_v62 = vrot.slane %v547_v54, 1  ;;  %v552_v63 = vrot.slane %v1137_v56, 1  ;;  %v1148_v2 = vmul.f32 %v273_v57, %v1046_v1  ;;  %v274_v3 = vmul.f32 %v273_v57, %v1044_v0 }
  0x3a   : > { %v435_v4 = vmul.f32 %v434_v58, %v1044_v0  ;;  %v1155_v5 = vsel %vm230_vm0, %v231_v59, %v232_v55  ;;  %v1160_v6 = vsel %vm230_vm0, %v392_v60, %v393_v61  ;;  %v1163_v7 = vmul.f32 %v434_v58, %v1046_v1 }
  0x3b   : > { %380 = vrot.lane.b32.xlu1 %v375_v17, %s968_s23  ;;  %v593_v8 = vstv %s1107_s4  ;;  %v1169_v9 = vsel %vm230_vm0, %v551_v62, %v552_v63  ;;  %v280_v10 = vrot.slane %v1148_v2, 2  ;;  %v279_v11 = vrot.slane %v274_v3, 2 }
  0x3c   : > { %378 = vrot.lane.b32.xlu0 %v374_v18, %s968_s23  ;;  %v439_v12 = vrot.slane %v435_v4, 2  ;;  %v422_v13 = vrot.slane %v1112_v42, 1  ;;  %v440_v14 = vrot.slane %v1163_v7, 2  ;;  %v594_v15 = vmul.f32 %v593_v8, %v1044_v0 }
  0x3d   : > { %v1176_v16 = vmul.f32 %v593_v8, %v1046_v1  ;;  %v423_v17 = vrot.slane %v1115_v43, 1  ;;  %v577_v18 = vmul.f32 %v576_v44, %v1044_v0  ;;  %v578_v19 = vmul.f32 %v576_v44, %v1046_v1 }
  0x3e   : > { %v1186_v20 = vsel %vm278_vm1, %v279_v11, %v280_v10  ;;  %v263_v21 = vsel %vm230_vm0, %v261_v48, %v262_v41  ;;  %v1192_v22 = vsel %vm278_vm1, %v439_v12, %v440_v14  ;;  %v598_v23 = vrot.slane %v594_v15, 2 }
  0x3f   : > { %539 = vrot.lane.b32.xlu1 %v534_v25, %s968_s23  ;;  %v599_v24 = vrot.slane %v1176_v16, 2  ;;  %v287_v25 = vstv %s1133_s5  ;;  %v447_v28 = vstv %s1144_s6  ;;  %v424_v29 = vsel %vm230_vm0, %v422_v13, %v423_v17  ;;  %s872_s5 = sshll.u32 (%p1014_p4), %s1002_s15, 4 }
  0x40   : > { %537 = vrot.lane.b32.xlu0 %v533_v27, %s968_s23  ;;  %v581_v27 = vrot.slane %v577_v18, 1  ;;  %v289_v31 = vmul.f32 %v287_v25, %v1046_v1  ;;  %v449_v33 = vmul.f32 %v447_v28, %v1046_v1  ;;  %v448_v37 = vmul.f32 %v447_v28, %v1044_v0 }
  0x41   : > { %v1199_v26 = vsel %vm278_vm1, %v598_v23, %v599_v24  ;;  %v606_v38 = vstv %s863_s7  ;;  %v464_v46 = vstv %s853_s10  ;;  %v623_v60 = vstv %s864_s11 }
  0x42   : > { %v293_v35 = vrot.slane %v289_v31, 2  ;;  %v452_v42 = vrot.slane %v448_v37, 2  ;;  %v607_v43 = vmul.f32 %v606_v38, %v1044_v0  ;;  %v608_v44 = vmul.f32 %v606_v38, %v1046_v1 }
  0x43   : > { %249 = vrot.lane.b32.xlu1 %v245_v30, %s967_s9  ;;  %v582_v30 = vrot.slane %v578_v19, 1  ;;  %v465_v52 = vmul.f32 %v464_v46, %v1044_v0  ;;  %v466_v59 = vmul.f32 %v464_v46, %v1046_v1  ;;  %v624_v8 = vmul.f32 %v623_v60, %v1044_v0 }
  0x44   : > { %247 = vrot.lane.b32.xlu0 %v246_v39, %s967_s9  ;;  %v453_v39 = vrot.slane %v449_v33, 2  ;;  %v612_v48 = vrot.slane %v608_v44, 2  ;;  %v611_v50 = vrot.slane %v607_v43, 2  ;;  %v625_v11 = vmul.f32 %v623_v60, %v1046_v1 }
  0x45   : > { %v583_v34 = vsel %vm230_vm0, %v581_v27, %v582_v30  ;;  %v469_v62 = vrot.slane %v465_v52, 2  ;;  %v470_v4 = vrot.slane %v466_v59, 2  ;;  %v628_v15 = vrot.slane %v624_v8, 2 }
  0x46   : > { %v613_v54 = vsel %vm278_vm1, %v611_v50, %v612_v48  ;;  %v629_v13 = vrot.slane %v625_v11, 2  ;;  %v355_v28 = vstv %s1242_s14  ;;  %v514_v33 = vstv %s1245_s17 }
  0x47   : > { %410 = vrot.lane.b32.xlu1 %v406_v32, %s967_s9  ;;  %v288_v32 = vmul.f32 %v287_v25, %v1044_v0  ;;  %v471_v12 = vsel %vm278_vm1, %v469_v62, %v470_v4  ;;  %v356_v31 = vmul.f32 %v355_v28, %v1044_v0  ;;  %v515_v38 = vmul.f32 %v514_v33, %v1044_v0 }
  0x48   : > { %408 = vrot.lane.b32.xlu0 %v407_v40, %s967_s9  ;;  %v304_v40 = vstv %s844_s8  ;;  %s685_s8 = scalar_lea.vmem (%p1014_p4), %s1328_s2, %s872_s5 }
  0x49   : > { %v306_v45 = vmul.f32 %v304_v40, %v1046_v1  ;;  %v305_v51 = vmul.f32 %v304_v40, %v1044_v0 }
  0x4b   : > { %569 = vrot.lane.b32.xlu1 %v565_v36, %s967_s9  ;;  %v292_v36 = vrot.slane %v288_v32, 2  ;;  %v310_v57 = vrot.slane %v306_v45, 2  ;;  %v309_v58 = vrot.slane %v305_v51, 2 }
  0x4c   : > { %567 = vrot.lane.b32.xlu0 %v566_v47, %s967_s9  ;;  %v454_v47 = vsel %vm278_vm1, %v452_v42, %v453_v39 }
  0x4d   : > { %v311_v3 = vsel %vm278_vm1, %v309_v58, %v310_v57 }
  0x4f   : > { %266 = vrot.lane.b32.xlu1 %v262_v41, %s968_s23  ;;  %v294_v41 = vsel %vm278_vm1, %v292_v36, %v293_v35 }
  0x50   : > { %264 = vrot.lane.b32.xlu0 %v263_v21, %s968_s23 }
  0x53   : > { %427 = vrot.lane.b32.xlu1 %v423_v17, %s968_s23  ;;  %v630_v17 = vsel %vm278_vm1, %v628_v15, %v629_v13 }
  0x54   : > { %425 = vrot.lane.b32.xlu0 %v424_v29, %s968_s23 }
  0x57   : > { %586 = vrot.lane.b32.xlu1 %v582_v30, %s968_s23 }
  0x58   : > { %584 = vrot.lane.b32.xlu0 %v583_v34, %s968_s23 }
  0x5b   : > { %297 = vrot.lane.b32.xlu1 %v293_v35, %s967_s9 }
  0x5c   : > { %295 = vrot.lane.b32.xlu0 %v294_v41, %s967_s9 }
  0x5f   : > { %457 = vrot.lane.b32.xlu1 %v453_v39, %s967_s9 }
  0x60   : > { %455 = vrot.lane.b32.xlu0 %v454_v47, %s967_s9 }
  0x63   : > { %616 = vrot.lane.b32.xlu1 %v612_v48, %s967_s9 }
  0x64   : > { %614 = vrot.lane.b32.xlu0 %v613_v54, %s967_s9  ;;  %s1240_s9 = sld [smem:[#allocation2]] }
  0x67   : > { %314 = vrot.lane.b32.xlu1 %v310_v57, %s968_s23 }
  0x68   : > { %312 = vrot.lane.b32.xlu0 %v311_v3, %s968_s23 }
  0x6a   : > { %v193_v21 = vstv %s1240_s9 }
  0x6b   : > { %474 = vrot.lane.b32.xlu1 %v470_v4, %s968_s23  ;;  %v194_v27 = vmul.f32 %v193_v21, %v1044_v0  ;;  %v195_v62 = vmul.f32 %v193_v21, %v1046_v1  ;;  %v516_v21 = vmul.f32 %v514_v33, %v1046_v1 }
  0x6c   : > { %472 = vrot.lane.b32.xlu0 %v471_v12, %s968_s23 }
  0x6f   : > { %633 = vrot.lane.b32.xlu1 %v629_v13, %s968_s23 }
  0x70   : > { %631 = vrot.lane.b32.xlu0 %v630_v17, %s968_s23 }
  0x9d   : > { %v365_v18 = vpop.permute.xlu1 %364 }
  0x9e   : > { %v203_v19 = vpop.permute.xlu0 %202  ;;  %v370_v37 = vadd.f32 %v365_v18, %v356_v31 }
  0x9f   : > { %v208_v32 = vadd.f32 %v203_v19, %v194_v27 }
  0xa1   : > { %v367_v23 = vpop.permute.xlu1 %366 }
  0xa2   : > { %v205_v25 = vpop.permute.xlu0 %204 }
  0xa3   : > { %v209_v12 = vadd.f32 %v205_v25, %v195_v62 }
  0xa5   : > { %v526_v29 = vpop.permute.xlu1 %525 }
  0xa6   : > { %v524_v30 = vpop.permute.xlu0 %523  ;;  %v530_v25 = vadd.f32 %v526_v29, %v516_v21 }
  0xa7   : > { %v529_v43 = vadd.f32 %v524_v30, %v515_v38 }
  0xa9   : > { %v219_v34 = vpop.permute.xlu1 %218 }
  0xaa   : > { %v217_v35 = vpop.permute.xlu0 %216  ;;  %v223_v19 = vadd.f32 %v219_v34, %v209_v12 }
  0xab   : > { %v222_v36 = vadd.f32 %v217_v35, %v208_v32 }
  0xad   : > { %v236_v39 = vadd.f32 %v1155_v5, %v222_v36  ;;  %v381_v40 = vpop.permute.xlu1 %380 }
  0xae   : > { %v379_v41 = vpop.permute.xlu0 %378 }
  0xaf   : > { %v384_v42 = vadd.f32 %v379_v41, %v370_v37 }
  0xb1   : > { %v397_v44 = vadd.f32 %v1160_v6, %v384_v42  ;;  %v540_v45 = vpop.permute.xlu1 %539 }
  0xb2   : > { %v538_v46 = vpop.permute.xlu0 %537  ;;  %v544_v37 = vadd.f32 %v540_v45, %v530_v25 }
  0xb3   : > { %v543_v47 = vadd.f32 %v538_v46, %v529_v43 }
  0xb5   : > { %v556_v48 = vadd.f32 %v1169_v9, %v543_v47  ;;  %v250_v50 = vpop.permute.xlu1 %249  ;;  %v357_v9 = vmul.f32 %v355_v28, %v1046_v1  ;;  %v237_v28 = vadd.f32 %v232_v55, %v223_v19  ;;  %v557_v1 = vadd.f32 %v552_v63, %v544_v37 }
  0xb6   : > { %v248_v51 = vpop.permute.xlu0 %247 }
  0xb7   : > { %v253_v0 = vadd.f32 %v248_v51, %v236_v39  ;;  %v371_v30 = vadd.f32 %v367_v23, %v357_v9  ;;  %v254_v36 = vadd.f32 %v250_v50, %v237_v28 }
  0xb9   : > { %v411_v52 = vpop.permute.xlu1 %410 }
  0xba   : > { %v409_v54 = vpop.permute.xlu0 %408 }
  0xbb   : > { %v414_v3 = vadd.f32 %v409_v54, %v397_v44 }
  0xbd   : > { %v570_v57 = vpop.permute.xlu1 %569 }
  0xbe   : > { %v568_v58 = vpop.permute.xlu0 %567  ;;  %v574_v55 = vadd.f32 %v570_v57, %v557_v1 }
  0xbf   : > { %v573_v13 = vadd.f32 %v568_v58, %v556_v48 }
  0xc1   : > { %v267_v59 = vpop.permute.xlu1 %266 }
  0xc2   : > { %v265_v5 = vpop.permute.xlu0 %264  ;;  %v271_v39 = vadd.f32 %v267_v59, %v254_v36 }
  0xc3   : > { %v270_v60 = vadd.f32 %v265_v5, %v253_v0 }
  0xc4   : > { %v285_v49 = vadd.f32 %v280_v10, %v271_v39 }
  0xc5   : > { %v284_v6 = vadd.f32 %v1186_v20, %v270_v60  ;;  %v428_v4 = vpop.permute.xlu1 %427  ;;  %v385_v20 = vadd.f32 %v381_v40, %v371_v30 }
  0xc6   : > { %v426_v8 = vpop.permute.xlu0 %425 }
  0xc7   : > { %v431_v11 = vadd.f32 %v426_v8, %v414_v3 }
  0xc9   : > { %v444_v15 = vadd.f32 %v1192_v22, %v431_v11  ;;  %v587_v17 = vpop.permute.xlu1 %586  ;;  %v398_v22 = vadd.f32 %v393_v61, %v385_v20 }
  0xca   : > { %v585_v18 = vpop.permute.xlu0 %584  ;;  %v591_v53 = vadd.f32 %v587_v17, %v574_v55 }
  0xcb   : > { %v590_v27 = vadd.f32 %v585_v18, %v573_v13  ;;  %v415_v23 = vadd.f32 %v411_v52, %v398_v22 }
  0xcc   : > { %v604_v46 = vadd.f32 %v599_v24, %v591_v53 }
  0xcd   : > { %v603_v31 = vadd.f32 %v1199_v26, %v590_v27  ;;  %v298_v32 = vpop.permute.xlu1 %297  ;;  %v432_v26 = vadd.f32 %v428_v4, %v415_v23 }
  0xce   : > { %v296_v35 = vpop.permute.xlu0 %295  ;;  %v302_v29 = vadd.f32 %v298_v32, %v285_v49 }
  0xcf   : > { %v301_v41 = vadd.f32 %v296_v35, %v284_v6  ;;  %v445_v61 = vadd.f32 %v440_v14, %v432_v26 }
  0xd1   : > { %v458_v34 = vpop.permute.xlu1 %457 }
  0xd2   : > { %v456_v38 = vpop.permute.xlu0 %455  ;;  %v462_v44 = vadd.f32 %v458_v34, %v445_v61 }
  0xd3   : > { %v461_v45 = vadd.f32 %v456_v38, %v444_v15 }
  0xd5   : > { %v617_v33 = vpop.permute.xlu1 %616 }
  0xd6   : > { %v615_v40 = vpop.permute.xlu0 %614  ;;  %v621_v58 = vadd.f32 %v617_v33, %v604_v46 }
  0xd7   : > { %v620_v0 = vadd.f32 %v615_v40, %v603_v31 }
  0xd9   : > { %v315_v42 = vpop.permute.xlu1 %314 }
  0xda   : > { %v313_v43 = vpop.permute.xlu0 %312  ;;  %v319_v56 = vadd.f32 %v315_v42, %v302_v29 }
  0xdb   : > { %v318_v63 = vadd.f32 %v313_v43, %v301_v41 }
  0xdc   : > { %323 = vst.msk [vmem:[%s1272_s12 + $0x8] sm:$0x3f] %vm322_vm2, %v319_v56  ;;  %v325_v7 = vsel %vm322_vm2, %v319_v56, 0.0  ;;  %v337_v14 = vmul.f32 %v319_v56, %v319_v56 }
  0xdd   : > { %321 = vst.msk [vmem:[%s1272_s12] sm:$0xff] %vm320_vm3, %v318_v63  ;;  %v324_v2 = vsel %vm320_vm3, %v318_v63, 0.0  ;;  %v336_v10 = vmul.f32 %v318_v63, %v318_v63  ;;  %v475_v47 = vpop.permute.xlu1 %474 }
  0xde   : > { %v473_v48 = vpop.permute.xlu0 %472  ;;  %v326_v50 = vadd.f32 %v325_v7, %v324_v2  ;;  %v479_v51 = vadd.f32 %v475_v47, %v462_v44  ;;  %v339_v57 = vsel %vm322_vm2, %v337_v14, 0.0 }
  0xdf   : > { %v478_v52 = vadd.f32 %v473_v48, %v461_v45  ;;  %v338_v54 = vsel %vm320_vm3, %v336_v10, 0.0 }
  0xe0   : > { %327 = vadd.xlane.f32.xlu0 %v326_v50  ;;  %v340_v59 = vadd.f32 %v339_v57, %v338_v54  ;;  %855 = vst.msk [vmem:[%s1272_s12 + $0x18] sm:$0x3f] %vm322_vm2, %v479_v51  ;;  %v484_v24 = vsel %vm322_vm2, %v479_v51, 0.0  ;;  %v496_v60 = vmul.f32 %v479_v51, %v479_v51 }
  0xe1   : > { %854 = vst.msk [vmem:[%s1272_s12 + $0x10] sm:$0xff] %vm320_vm3, %v478_v52  ;;  %v483_v16 = vsel %vm320_vm3, %v478_v52, 0.0  ;;  %v495_v5 = vmul.f32 %v478_v52, %v478_v52  ;;  %v634_v62 = vpop.permute.xlu1 %633 }
  0xe2   : > { %v632_v3 = vpop.permute.xlu0 %631  ;;  %341 = vadd.xlane.f32.xlu1 %v340_v59  ;;  %v485_v6 = vadd.f32 %v484_v24, %v483_v16  ;;  %v638_v4 = vadd.f32 %v634_v62, %v621_v58  ;;  %v498_v9 = vsel %vm322_vm2, %v496_v60, 0.0 }
  0xe3   : > { %v637_v8 = vadd.f32 %v632_v3, %v620_v0  ;;  %v497_v11 = vsel %vm320_vm3, %v495_v5, 0.0  ;;  %v725_v3 = vld [vmem:[%s1272_s12 + $0x8] sm:$0xff] (%p1014_p4) }
  0xe4   : > { %486 = vadd.xlane.f32.xlu0 %v485_v6  ;;  %v499_v12 = vadd.f32 %v498_v9, %v497_v11  ;;  %866 = vst.msk [vmem:[%s1272_s12 + $0x28] sm:$0x3f] %vm322_vm2, %v638_v4  ;;  %v643_v15 = vsel %vm322_vm2, %v638_v4, 0.0  ;;  %v655_v18 = vmul.f32 %v638_v4, %v638_v4  ;;  %v723_v62 = vld [vmem:[%s1272_s12] sm:$0xff] (%p1014_p4)  ;;  %726 = vst [vmem:[%s685_s8 + $0x8] sm:$0xff] (%p1014_p4), %v725_v3 }
  0xe5   : > { %865 = vst.msk [vmem:[%s1272_s12 + $0x20] sm:$0xff] %vm320_vm3, %v637_v8  ;;  %v642_v13 = vsel %vm320_vm3, %v637_v8, 0.0  ;;  %v654_v17 = vmul.f32 %v637_v8, %v637_v8  ;;  %724 = vst [vmem:[%s685_s8] sm:$0xff] (%p1014_p4), %v723_v62 }
  0xe6   : > { %v644_v19 = vadd.f32 %v643_v15, %v642_v13  ;;  %v657_v30 = vsel %vm322_vm2, %v655_v18, 0.0 }
  0xe7   : > { %v656_v27 = vsel %vm320_vm3, %v654_v17, 0.0  ;;  %v729_v4 = vld [vmem:[%s1272_s12 + $0x18] sm:$0xff] (%p1014_p4) }
  0xe8   : > { %645 = vadd.xlane.f32.xlu1 %v644_v19  ;;  %500 = vadd.xlane.f32.xlu0 %v499_v12  ;;  %v658_v21 = vadd.f32 %v657_v30, %v656_v27  ;;  %v727_v6 = vld [vmem:[%s1272_s12 + $0x10] sm:$0xff] (%p1014_p4)  ;;  %730 = vst [vmem:[%s685_s8 + $0x28] sm:$0xff] (%p1014_p4), %v729_v4 }
  0xe9   : > { %728 = vst [vmem:[%s685_s8 + $0x20] sm:$0xff] (%p1014_p4), %v727_v6 }
  0xeb   : > { %v733_v11 = vld [vmem:[%s1272_s12 + $0x28] sm:$0xff] (%p1014_p4) }
  0xec   : > { %659 = vadd.xlane.f32.xlu0 %v658_v21  ;;  %v731_v8 = vld [vmem:[%s1272_s12 + $0x20] sm:$0xff] (%p1014_p4)  ;;  %734 = vst [vmem:[%s685_s8 + $0x48] sm:$0xff] (%p1014_p4), %v733_v11 }
  0xed   : > { %732 = vst [vmem:[%s685_s8 + $0x40] sm:$0xff] (%p1014_p4), %v731_v8 }
 0x16d   : > { %v328_v31 = vpop.xlane.xlu0 %327 }
 0x16e   : > { %v329_v20 = vrot.slane %v328_v31, 4 }
 0x16f   : > { %v342_v32 = vpop.xlane.xlu1 %341 }
 0x170   : > { %v330_v35 = vadd.f32 %v329_v20, %v328_v31  ;;  %v343_v28 = vrot.slane %v342_v32, 4 }
 0x171   : > { %v487_v25 = vpop.xlane.xlu0 %486 }
 0x172   : > { %v331_v36 = vrot.slane %v330_v35, 2  ;;  %v344_v37 = vadd.f32 %v343_v28, %v342_v32  ;;  %v488_v22 = vrot.slane %v487_v25, 4 }
 0x174   : > { %v345_v34 = vrot.slane %v344_v37, 2  ;;  %v489_v38 = vadd.f32 %v488_v22, %v487_v25  ;;  %v332_v39 = vadd.f32 %v331_v36, %v330_v35 }
 0x175   : > { %v646_v23 = vpop.xlane.xlu1 %645  ;;  %v501_v1 = vpop.xlane.xlu0 %500 }
 0x176   : > { %v490_v26 = vrot.slane %v489_v38, 2  ;;  %v647_v33 = vrot.slane %v646_v23, 4  ;;  %v502_v40 = vrot.slane %v501_v1, 4  ;;  %v333_v49 = vrot.slane %v332_v39, 1 }
 0x177   : > { %v346_v55 = vadd.f32 %v345_v34, %v344_v37 }
 0x178   : > { %v648_v29 = vadd.f32 %v647_v33, %v646_v23  ;;  %v503_v41 = vadd.f32 %v502_v40, %v501_v1  ;;  %v334_v53 = vadd.f32 %v333_v49, %v332_v39  ;;  %v491_v61 = vadd.f32 %v490_v26, %v489_v38 }
 0x179   : > { %v660_v42 = vpop.xlane.xlu0 %659  ;;  %v347_v43 = vrot.slane %v346_v55, 1 }
 0x17a   : > { %v649_v56 = vrot.slane %v648_v29, 2  ;;  %v504_v63 = vrot.slane %v503_v41, 2  ;;  %v661_v44 = vrot.slane %v660_v42, 4  ;;  %874 = vpush %v334_v53  ;;  %v492_v45 = vrot.slane %v491_v61, 1 }
 0x17b   : > { %v348_v2 = vadd.f32 %v347_v43, %v346_v55 }
 0x17c   : > { %v650_v7 = vadd.f32 %v649_v56, %v648_v29  ;;  %v662_v10 = vadd.f32 %v661_v44, %v660_v42  ;;  %v493_v14 = vadd.f32 %v492_v45, %v491_v61  ;;  %v505_v46 = vadd.f32 %v504_v63, %v503_v41 }
 0x17d   : > { %876 = vpush %v348_v2 }
 0x17e   : > { %v663_v47 = vrot.slane %v662_v10, 2  ;;  %878 = vpush %v493_v14  ;;  %v506_v48 = vrot.slane %v505_v46, 1  ;;  %v651_v50 = vrot.slane %v650_v7, 1 }
 0x180   : > { %v664_v51 = vadd.f32 %v663_v47, %v662_v10  ;;  %v507_v52 = vadd.f32 %v506_v48, %v505_v46  ;;  %v652_v54 = vadd.f32 %v651_v50, %v650_v7 }
 0x182   : > { %880 = vpush %v507_v52  ;;  %v665_v57 = vrot.slane %v664_v51, 1 }
 0x183   : > { %882 = vpush %v652_v54 }
 0x184   : > { %v666_v58 = vadd.f32 %v665_v57, %v664_v51 }
 0x186   : > { %884 = vpush %v666_v58 }
 0x1ab   : > { %s875_s26 = spop %874 }
 0x1ac   : > { %v350_v0 = vstv %s875_s26 }
 0x1ad   : > { %351 = vst [vmem:[%s189_s25] sm:$0x1] %v350_v0 }
 0x1ae   : > { %s877_s27 = spop %876 }
 0x1af   : > { %v352_v59 = vstv %s877_s27  ;;  %s879_s28 = spop %878 }
 0x1b0   : > { %353 = vst [vmem:[%s189_s25 + $0x1] sm:$0x1] %v352_v59  ;;  %v509_v16 = vstv %s879_s28 }
 0x1b1   : > { %510 = vst [vmem:[%s189_s25 + $0x2] sm:$0x1] %v509_v16 }
 0x1b3   : > { %s881_s30 = spop %880  ;;  %682 = sbr.rel (!%p1014_p4) target bundleno = 442 (0x1ba), region = 36 }
 0x1b4   : > { %v511_v24 = vstv %s881_s30  ;;  %s883_s4 = spop %882 }
 0x1b5   : > { %512 = vst [vmem:[%s189_s25 + $0x3] sm:$0x1] %v511_v24  ;;  %v668_v5 = vstv %s883_s4 }
 0x1b6   : > { %669 = vst [vmem:[%s189_s25 + $0x4] sm:$0x1] %v668_v5 }
 0x1b7   : > { %s885_s29 = spop %884 }
 0x1b8   : > { %v670_v60 = vstv %s885_s29 }
 0x1b9   : > { %671 = vst [vmem:[%s189_s25 + $0x5] sm:$0x1] %v670_v60 }
 0x1ba PF: > { %p12_p4 = scmp.ge.s32.totalorder %s1004_s16, 4   ;;  %s1332_s12 = smov %s960_s13 }
 0x1bb   : > { %s1333_s13 = smov %s1012_s19  ;;  %s1334_s14 = smov %s1004_s16 }
 0x1bc   :  { %14 = sbr.rel (!%p12_p4) target bundleno = 2 (0x2), region = 115 }
 0x1c3   :  { %760 = vsyncpa [#allocation3], 1 }
 0x1c4   :  { %762 = vsyncpa [#allocation3 + $0x1], 1 }

</bundles_post_ra>
